<compile_context>
chip_gen: v7x
topology: tpu7x:2x2x1
jax: 0.10.0
libtpu: 0.0.40
codegen_flags: <defaults>
</compile_context>

<pallas_src>
import jax
import jax.numpy as jnp
from jax.experimental import pallas as pl
from jax.experimental.pallas import tpu as pltpu


def _round_up(n: int, m: int) -> int:
    return ((n + m - 1) // m) * m


def _pick_tile(h: int, max_tile: int) -> int:
    """Largest lane-aligned tile of h that is <= max_tile; full h if none divides."""
    if h <= max_tile:
        return h
    for c in (4096, 2048, 1024, 512, 256, 128):
        if c <= max_tile and h % c == 0:
            return c
    return h  # h not a multiple of 128: a full-extent block is always legal.


# ---------------------------------------------------------------------------
# Kernels
# ---------------------------------------------------------------------------
def _resblock_kernel_fullk(xk_ref, w_ref, b_ref, xr_ref, o_ref):
    """Full-K path: one matmul per (tm, tn) output tile, epilogue fused."""
    xk = xk_ref[...].astype(w_ref.dtype)          # MXU dtype (bf16 by default)
    h = jax.lax.dot_general(                      # x @ W.T  (contract `in` dims)
        xk, w_ref[...],
        dimension_numbers=(((1,), (1,)), ((), ())),
        preferred_element_type=jnp.float32)
    h = h + b_ref[...].astype(jnp.float32)        # (tm, tn) + (1, tn)
    silu = h * jax.nn.sigmoid(h)                  # f32 on VPU/EUP
    o_ref[...] = (xr_ref[...].astype(jnp.float32) + silu).astype(o_ref.dtype)


def _resblock_kernel_kacc(xk_ref, w_ref, b_ref, xr_ref, o_ref, acc_ref):
    """K-tiled path: grid = (M_tiles, N_tiles, K_tiles), K innermost, f32 acc."""
    k = pl.program_id(2)

    @pl.when(k == 0)
    def _():
        acc_ref[...] = jnp.zeros_like(acc_ref)

    xk = xk_ref[...].astype(w_ref.dtype)
    acc_ref[...] += jax.lax.dot_general(
        xk, w_ref[...],
        dimension_numbers=(((1,), (1,)), ((), ())),
        preferred_element_type=jnp.float32)

    @pl.when(k == pl.num_programs(2) - 1)
    def _():
        h = acc_ref[...] + b_ref[...].astype(jnp.float32)
        silu = h * jax.nn.sigmoid(h)
        o_ref[...] = (xr_ref[...].astype(jnp.float32) + silu).astype(o_ref.dtype)


# ---------------------------------------------------------------------------
# Wrapper
# ---------------------------------------------------------------------------
def resblock(x, weight, bias, *, tm=256, feature_tile=512,
             mxu_dtype=jnp.bfloat16, tile_budget_bytes=4 * 1024 * 1024):
    """x: (..., H); weight: (H, H) PyTorch-style (out, in); bias: (H,).

    Returns x + SiLU(x @ weight.T + bias), same shape/dtype as x.
    """
    orig_shape = x.shape
    H = orig_shape[-1]
    assert weight.shape == (H, H), weight.shape
    assert bias.shape == (H,), bias.shape

    x2 = x.reshape(-1, H)
    M = x2.shape[0]

    # NOTE: for static weights, cast to bf16 once outside the hot path; this
    # per-call cast is then a no-op.
    w_mxu = weight if mxu_dtype is None else weight.astype(mxu_dtype)
    b2 = bias.reshape(1, H)

    it_x = jnp.dtype(x.dtype).itemsize
    it_w = jnp.dtype(w_mxu.dtype).itemsize
    it_b = jnp.dtype(bias.dtype).itemsize

    # --- tile selection -----------------------------------------------------
    # Rows: big tiles to fill the MXU, never bigger than (padded) M.
    tm = min(tm, _round_up(M, 16))
    Mp = _round_up(M, tm)
    # Output columns: lane-aligned, capped by feature_tile.
    tn = _pick_tile(H, feature_tile)
    # Contraction: full K whenever the weight/x tiles fit the per-tile budget
    # (no accumulator, fewest grid steps); otherwise a large K tile.
    max_tk_by_w = tile_budget_bytes // max(1, tn * it_w)
    max_tk_by_x = tile_budget_bytes // max(1, tm * it_x)
    max_tk = max(128, min(max_tk_by_w, max_tk_by_x))
    tk = _pick_tile(H, max_tk)

    ni, nj, nk = Mp // tm, H // tn, H // tk

    x_p = x2 if Mp == M else jnp.pad(x2, ((0, Mp - M), (0, 0)))

    # --- pallas_call configuration -------------------------------------------
    if nk == 1:
        kernel = _resblock_kernel_fullk
        grid = (ni, nj)
        in_specs = [
            pl.BlockSpec((tm, H), lambda i, j: (i, 0)),    # x for matmul (full K)
            pl.BlockSpec((tn, H), lambda i, j: (j, 0)),    # weight (out, in) row-block
            pl.BlockSpec((1, tn), lambda i, j: (0, j)),    # bias slice
            pl.BlockSpec((tm, tn), lambda i, j: (i, j)),   # x for residual
        ]
        out_specs = pl.BlockSpec((tm, tn), lambda i, j: (i, j))
        scratch = ()
        dims = ("parallel", "parallel")
        acc_bytes = 0
    else:
        kernel = _resblock_kernel_kacc
        grid = (ni, nj, nk)
        in_specs = [
            pl.BlockSpec((tm, tk), lambda i, j, k: (i, k)),   # x for matmul (K-tiled)
            pl.BlockSpec((tn, tk), lambda i, j, k: (j, k)),   # weight tile
            pl.BlockSpec((1, tn), lambda i, j, k: (0, j)),    # bias slice
            pl.BlockSpec((tm, tn), lambda i, j, k: (i, j)),   # x for residual
        ]
        out_specs = pl.BlockSpec((tm, tn), lambda i, j, k: (i, j))
        scratch = (pltpu.VMEM((tm, tn), jnp.float32),)
        dims = ("parallel", "parallel", "arbitrary")
        acc_bytes = tm * tn * 4

    # Rough double-buffered VMEM footprint -> raise the scoped-VMEM limit so the
    # compiler accepts MXU-sized tiles (stay under v7x's 64 MiB physical VMEM).
    est = (2 * (tm * tk * it_x          # x matmul tile
                + tn * tk * it_w        # weight tile
                + tn * it_b             # bias tile
                + tm * tn * it_x        # residual x tile
                + tm * tn * it_x)       # output tile
           + acc_bytes)
    vmem_limit = int(min(64 * 1024 * 1024, max(32 * 1024 * 1024, 2 * est)))

    cost = pl.CostEstimate(
        flops=2 * Mp * H * H,
        transcendentals=Mp * H,
        bytes_accessed=(2 * Mp * H * it_x     # x read twice (matmul + residual)
                        + H * H * it_w        # weight
                        + H * it_b            # bias
                        + Mp * H * it_x),     # output
    )

    out = pl.pallas_call(
        kernel,
        out_shape=jax.ShapeDtypeStruct((Mp, H), x.dtype),
        grid_spec=pltpu.PrefetchScalarGridSpec(
            num_scalar_prefetch=0,
            grid=grid,
            in_specs=in_specs,
            out_specs=out_specs,
            scratch_shapes=scratch,
        ),
        compiler_params=pltpu.CompilerParams(
            dimension_semantics=dims,
            vmem_limit_bytes=vmem_limit),
        cost_estimate=cost,
    )(x_p, w_mxu, b2, x_p)

    if Mp != M:
        out = out[:M]
    return out.reshape(orig_shape)


# ---------------------------------------------------------------------------
# Self-test
# ---------------------------------------------------------------------------
if __name__ == "__main__":
    hidden_size = 256
    batch, seq = 2, 9   # 18 rows after flatten: exercises ragged-row padding

    key = jax.random.PRNGKey(0)
    kx, kw, kb = jax.random.split(key, 3)

    x = jax.random.normal(kx, (batch, seq, hidden_size), dtype=jnp.float32)
    # Random (nonzero) weight so a transposed / wrong-contraction bug is caught.
    weight = 0.05 * jax.random.normal(kw, (hidden_size, hidden_size), dtype=jnp.float32)
    bound = 1.0 / jnp.sqrt(hidden_size)
    bias = jax.random.uniform(kb, (hidden_size,), minval=-bound, maxval=bound,
                              dtype=jnp.float32)

    # Pure-JAX reference.
    h_ref = x @ weight.T + bias
    ref = x + h_ref * jax.nn.sigmoid(h_ref)

    # 1) Default path: bf16 MXU inputs, full-K fused kernel (no accumulator).
    out_bf16 = resblock(x, weight, bias)
    jax.block_until_ready(out_bf16)
    assert out_bf16.shape == x.shape
    assert jnp.allclose(out_bf16, ref, atol=2e-2, rtol=2e-2), \
        float(jnp.max(jnp.abs(out_bf16 - ref)))

    # 2) f32 MXU with a tiny tile budget to force the K-tiled accumulator path.
    out_f32 = resblock(x, weight, bias, mxu_dtype=None,
                       tile_budget_bytes=128 * 1024)
    jax.block_until_ready(out_f32)
    assert out_f32.shape == x.shape
    assert jnp.allclose(out_f32, ref, atol=1e-4, rtol=1e-4), \
        float(jnp.max(jnp.abs(out_f32 - ref)))

    # 3) Module's actual init (zero weight): output must equal x + SiLU(bias).
    out_zero = resblock(x, jnp.zeros_like(weight), bias)
    jax.block_until_ready(out_zero)
    zref = x + bias * jax.nn.sigmoid(bias)
    assert jnp.allclose(out_zero, zref, atol=1e-2, rtol=1e-2)

    print("KERNEL_OK")
</pallas_src>

<mosaic_0001>
module attributes {stable_mosaic.version = 11 : i64} {
  func.func @_resblock_kernel_fullk(%arg0: i32, %arg1: i32, %arg2: memref<32x256xf32, #tpu.memory_space<vmem>>, %arg3: memref<256x256xbf16, #tpu.memory_space<vmem>>, %arg4: memref<1x256xf32, #tpu.memory_space<vmem>>, %arg5: memref<32x256xf32, #tpu.memory_space<vmem>>, %arg6: memref<32x256xf32, #tpu.memory_space<vmem>>) attributes {dimension_semantics = [#tpu.dimension_semantics<parallel>, #tpu.dimension_semantics<parallel>], iteration_bounds = array<i64: 1, 1>, scalar_prefetch = 0 : i64, scratch_operands = 0 : i64, tpu.core_type = #tpu.core_type<tc>, window_params = [{transform_indices = @transform_0, window_bounds = array<i64: 32, 256>}, {transform_indices = @transform_1, window_bounds = array<i64: 256, 256>}, {transform_indices = @transform_2, window_bounds = array<i64: 1, 256>}, {transform_indices = @transform_3, window_bounds = array<i64: 32, 256>}, {transform_indices = @transform_4, window_bounds = array<i64: 32, 256>}]} {
    %c0 = arith.constant 0 : index
    %c0_0 = arith.constant 0 : index
    %0 = vector.load %arg2[%c0, %c0_0] : memref<32x256xf32, #tpu.memory_space<vmem>>, vector<32x256xf32>
    %1 = arith.truncf %0 : vector<32x256xf32> to vector<32x256xbf16>
    %c0_1 = arith.constant 0 : index
    %c0_2 = arith.constant 0 : index
    %2 = vector.load %arg3[%c0_1, %c0_2] : memref<256x256xbf16, #tpu.memory_space<vmem>>, vector<256x256xbf16>
    %cst = arith.constant dense<0.000000e+00> : vector<32x256xf32>
    %3 = tpu.matmul %1, %2, %cst {dimension_numbers = #tpu.dot_dimension_numbers<[1], [1], [0], [0], [0, 0, 1, 0], [], []>} : vector<32x256xbf16>, vector<256x256xbf16>, vector<32x256xf32> -> vector<32x256xf32>
    %c0_3 = arith.constant 0 : index
    %c0_4 = arith.constant 0 : index
    %4 = vector.load %arg4[%c0_3, %c0_4] : memref<1x256xf32, #tpu.memory_space<vmem>>, vector<1x256xf32>
    %5 = vector.broadcast %4 : vector<1x256xf32> to vector<32x256xf32>
    %6 = arith.addf %3, %5 : vector<32x256xf32>
    %7 = arith.negf %6 : vector<32x256xf32>
    %8 = math.exp %7 : vector<32x256xf32>
    %cst_5 = arith.constant 1.000000e+00 : f32
    %9 = vector.broadcast %cst_5 : f32 to vector<32x256xf32>
    %10 = arith.addf %9, %8 : vector<32x256xf32>
    %11 = arith.divf %9, %10 : vector<32x256xf32>
    %12 = arith.mulf %6, %11 : vector<32x256xf32>
    %c0_6 = arith.constant 0 : index
    %c0_7 = arith.constant 0 : index
    %13 = vector.load %arg5[%c0_6, %c0_7] : memref<32x256xf32, #tpu.memory_space<vmem>>, vector<32x256xf32>
    %14 = arith.addf %13, %12 : vector<32x256xf32>
    %c0_8 = arith.constant 0 : index
    %c0_9 = arith.constant 0 : index
    %15 = vector.load %arg6[%c0_8, %c0_9] : memref<32x256xf32, #tpu.memory_space<vmem>>, vector<32x256xf32>
    tpu.vector_store %arg6[%c0_8, %c0_9], %14 {strides = array<i32>} : memref<32x256xf32, #tpu.memory_space<vmem>>, vector<32x256xf32>,
    return
  }
  func.func @transform_0(%arg0: i32, %arg1: i32) -> (i32, i32) {
    %c0_i32 = arith.constant 0 : i32
    %c0_i32_0 = arith.constant 0 : i32
    return %arg0, %c0_i32 : i32, i32
  }
  func.func @transform_1(%arg0: i32, %arg1: i32) -> (i32, i32) {
    %c0_i32 = arith.constant 0 : i32
    %c0_i32_0 = arith.constant 0 : i32
    return %arg1, %c0_i32 : i32, i32
  }
  func.func @transform_2(%arg0: i32, %arg1: i32) -> (i32, i32) {
    %c0_i32 = arith.constant 0 : i32
    %c0_i32_0 = arith.constant 0 : i32
    return %c0_i32, %arg1 : i32, i32
  }
  func.func @transform_3(%arg0: i32, %arg1: i32) -> (i32, i32) {
    %c0_i32 = arith.constant 0 : i32
    return %arg0, %arg1 : i32, i32
  }
  func.func @transform_4(%arg0: i32, %arg1: i32) -> (i32, i32) {
    %c0_i32 = arith.constant 0 : i32
    return %arg0, %arg1 : i32, i32
  }
}

</mosaic_0001>

<bundles_post_ra>
// kernel: tpu_custom_call.1
= control target key start
LH: loop header
LB: loop body
LE: loop exit
PB: predicated region body
PF: predicated region fallthrough
CT: control target
= control target key end

     0   :  { %9 = vsyncpa [#allocation3], 0  ;;  %s793_s0 = inlined_call_operand.hbm [shape: f32[32,256], index: 0, kind: input, shape index: {}]   ;;  %s794_s1 = inlined_call_operand.hbm [shape: bf16[256,256], index: 1, kind: input, shape index: {}]   ;;  %s795_s2 = inlined_call_operand.vmem [shape: f32[1,256], index: 2, kind: input, shape index: {}]   ;;  %s796_s3 = inlined_call_operand.hbm [shape: f32[32,256], index: 3, kind: input, shape index: {}]   ;;  %s797_s4 = inlined_call_operand.hbm [shape: f32[32,256], index: 4, kind: output, shape index: {}]  }
   0x1   :  { %10 = vsyncpa [#allocation6], 0 }
   0x2   :  { %11 = vsyncpa [#allocation4], 0  ;;  %s680_s15 = smov [#allocation5]   ;;  %s586_s19 = scalar_lea.hbm %s794_s1, 4096 }
   0x3   :  { %s29_s16 = sshll.u32 %s680_s15, 4  ;;  %p587_p0 = scmp.ne.s32.totalorder %s794_s1, %s586_s19  ;;  %s30_s16 = int_to_ptr.vmem [resolvable:$true] %s29_s16 }
   0x4   :  { %p590_p1 = scmp.lt.u32.totalorder %s586_s19, %s794_s1 }
   0x6   :  { %p592_p2 = pnand %p590_p1, %p587_p0 }
   0x8   :  { %595 = shalt.err (!%p592_p2)
}
   0x9   :  { %s596_s24 = scalar_lea.vmem %s30_s16, 4096  ;;  %p601_p4 = scmp.lt.s32.totalorder %s30_s16, %s30_s16 }
   0xa   :  { %p597_p3 = scmp.ne.s32.totalorder %s30_s16, %s596_s24  ;;  %p602_p5 = scmp.lt.s32.totalorder %s596_s24, %s596_s24 }
   0xc   :  { %p603_p6 = por %p602_p5, %p601_p4 }
   0xe   :  { %p604_p7 = pnand %p603_p6, %p597_p3 }
  0x10   :  { %607 = shalt.err (!%p604_p7)
}
  0x11   :  { %s681_s25 = smov 128   ;;  %s682_s26 = smov 8  }
  0x12   :  { %35 = dma.hbm_to_vmem [thread:$0]  %s794_s1, 4096, %s30_s16, [#allocation6], %s681_s25, %s681_s25, %s682_s26  }
  0x13   :  { %s683_s29 = smov [#allocation2]   ;;  %s608_s7 = scalar_lea.hbm %s793_s0, 1024 }
  0x14   :  { %s17_s30 = sshll.u32 %s683_s29, 4  ;;  %p609_p8 = scmp.ne.s32.totalorder %s793_s0, %s608_s7  ;;  %s18_s30 = int_to_ptr.vmem [resolvable:$true] %s17_s30 }
  0x15   :  { %p612_p9 = scmp.lt.u32.totalorder %s608_s7, %s793_s0 }
  0x17   :  { %p614_p10 = pnand %p612_p9, %p609_p8 }
  0x19   :  { %617 = shalt.err (!%p614_p10)
}
  0x1a   :  { %s618_s12 = scalar_lea.vmem %s18_s30, 1024  ;;  %p623_p12 = scmp.lt.s32.totalorder %s18_s30, %s18_s30 }
  0x1b   :  { %p619_p11 = scmp.ne.s32.totalorder %s18_s30, %s618_s12  ;;  %p624_p13 = scmp.lt.s32.totalorder %s618_s12, %s618_s12 }
  0x1d   :  { %p625_p0 = por %p624_p13, %p623_p12 }
  0x1f   :  { %p626_p1 = pnand %p625_p0, %p619_p11 }
  0x21   :  { %629 = shalt.err (!%p626_p1)
}
  0x22   :  { %s684_s1 = smov 256   ;;  %s685_s13 = smov 16  }
  0x23   :  { %23 = dma.hbm_to_vmem [thread:$0]  %s793_s0, 1024, %s18_s30, [#allocation3], %s684_s1, %s684_s1, %s685_s13  }
  0x24   :  { %s686_s16 = smov [#allocation7]   ;;  %s630_s20 = scalar_lea.hbm %s796_s3, 1024 }
  0x25   :  { %s43_s17 = sshll.u32 %s686_s16, 4  ;;  %p631_p2 = scmp.ne.s32.totalorder %s796_s3, %s630_s20  ;;  %s44_s17 = int_to_ptr.vmem [resolvable:$true] %s43_s17 }
  0x26   :  { %p634_p3 = scmp.lt.u32.totalorder %s630_s20, %s796_s3 }
  0x28   :  { %p636_p4 = pnand %p634_p3, %p631_p2 }
  0x2a   :  { %639 = shalt.err (!%p636_p4)
}
  0x2b   :  { %s640_s25 = scalar_lea.vmem %s44_s17, 1024  ;;  %p645_p6 = scmp.lt.s32.totalorder %s44_s17, %s44_s17 }
  0x2c   :  { %p641_p5 = scmp.ne.s32.totalorder %s44_s17, %s640_s25  ;;  %p646_p7 = scmp.lt.s32.totalorder %s640_s25, %s640_s25 }
  0x2e   :  { %p647_p8 = por %p646_p7, %p645_p6 }
  0x30   :  { %p648_p9 = pnand %p647_p8, %p641_p5 }
  0x32   :  { %651 = shalt.err (!%p648_p9)
}
  0x33   :  { %49 = dma.hbm_to_vmem [thread:$0]  %s796_s3, 1024, %s44_s17, [#allocation6], %s684_s1, %s684_s1, %s685_s13  }
  0x34   :  { %674 = dma.done.wait [#allocation3], 1024  }
  0x35   :  { %675 = vsyncadd [#allocation3], 4294966272 }
  0x36   :  { %676 = dma.done.wait [#allocation6], 5120  }
  0x37   :  { %677 = vsyncadd [#allocation6], 4294962176  ;;  %v506_v0 = vld [vmem:[#allocation5 + $0x4] ss:$8 sps:$4 sm:$0xff]   ;;  %v508_v1 = vld [vmem:[#allocation5] ss:$8 sps:$4 sm:$0xff]   ;;  %v105_v44 = vlaneseq }
  0x38   :  { %275 = vmatprep.subr.bf16.mxu0 %v506_v0  ;;  %466 = vmatprep.subr.bf16.mxu1 %v506_v0  ;;  %v509_v2 = vld [vmem:[#allocation5 + $0x14] ss:$8 sps:$4 sm:$0xff]   ;;  %v511_v3 = vld [vmem:[#allocation5 + $0x10] ss:$8 sps:$4 sm:$0xff]   ;;  %v512_v4 = vld [vmem:[#allocation5 + $0x24] ss:$8 sps:$4 sm:$0xff]  }
  0x39   :  { %276 = vmatpush1.bf16.xpose.msra.mxu0 %v508_v1  ;;  %482 = vmatpush1.bf16.xpose.msra.mxu1 %v508_v1  ;;  %v514_v5 = vld [vmem:[#allocation5 + $0x20] ss:$8 sps:$4 sm:$0xff]   ;;  %v515_v6 = vld [vmem:[#allocation5 + $0x34] ss:$8 sps:$4 sm:$0xff]   ;;  %v517_v12 = vld [vmem:[#allocation5 + $0x30] ss:$8 sps:$4 sm:$0xff]  }
  0x3a   :  { %277 = vmatprep.subr.bf16.mxu0 %v509_v2  ;;  %467 = vmatprep.subr.bf16.mxu1 %v509_v2  ;;  %v60_v7 = vld [vmem:[#allocation2 + $0x8] sm:$0xff]  ;;  %v62_v8 = vld [vmem:[#allocation2 + $0x18] sm:$0xff]  ;;  %v59_v38 = vld [vmem:[#allocation2] sm:$0xff]  ;;  %v106_v45 = vshrl.u32 %v105_v44, 7 }
  0x3b   :  { %v68_v9 = vpack.c.bf16 %v62_v8, %v60_v7  ;;  %v64_v10 = vld [vmem:[#allocation2 + $0x28] sm:$0xff]  ;;  %v66_v11 = vld [vmem:[#allocation2 + $0x38] sm:$0xff]  ;;  %v61_v39 = vld [vmem:[#allocation2 + $0x10] sm:$0xff] }
  0x3c   :  { %v70_v13 = vpack.c.bf16 %v66_v11, %v64_v10  ;;  %v518_v14 = vld [vmem:[#allocation5 + $0x44] ss:$8 sps:$4 sm:$0xff]   ;;  %v520_v15 = vld [vmem:[#allocation5 + $0x40] ss:$8 sps:$4 sm:$0xff]   ;;  %v521_v16 = vld [vmem:[#allocation5 + $0x54] ss:$8 sps:$4 sm:$0xff]   ;;  %v67_v42 = vpack.c.bf16 %v61_v39, %v59_v38 }
  0x3d   :  { %307 = vmatprep.mubr.bf16.mxu0 %v68_v9  ;;  %v523_v17 = vld [vmem:[#allocation5 + $0x50] ss:$8 sps:$4 sm:$0xff]   ;;  %v524_v18 = vld [vmem:[#allocation5 + $0x64] ss:$8 sps:$4 sm:$0xff]   ;;  %v526_v19 = vld [vmem:[#allocation5 + $0x60] ss:$8 sps:$4 sm:$0xff]  }
  0x3e   :  { %317 = vmatprep.mubr.bf16.mxu1 %v70_v13  ;;  %v527_v20 = vld [vmem:[#allocation5 + $0x74] ss:$8 sps:$4 sm:$0xff]   ;;  %v529_v21 = vld [vmem:[#allocation5 + $0x70] ss:$8 sps:$4 sm:$0xff]   ;;  %v530_v22 = vld [vmem:[#allocation5 + $0x84] ss:$8 sps:$4 sm:$0xff]  }
  0x3f   :  { %v532_v23 = vld [vmem:[#allocation5 + $0x80] ss:$8 sps:$4 sm:$0xff]   ;;  %v533_v24 = vld [vmem:[#allocation5 + $0x94] ss:$8 sps:$4 sm:$0xff]   ;;  %v535_v25 = vld [vmem:[#allocation5 + $0x90] ss:$8 sps:$4 sm:$0xff]  }
  0x40   :  { %v536_v26 = vld [vmem:[#allocation5 + $0xa4] ss:$8 sps:$4 sm:$0xff]   ;;  %v538_v27 = vld [vmem:[#allocation5 + $0xa0] ss:$8 sps:$4 sm:$0xff]   ;;  %v539_v28 = vld [vmem:[#allocation5 + $0xb4] ss:$8 sps:$4 sm:$0xff]  }
  0x41   :  { %278 = vmatpush1.bf16.xpose.msra.mxu0 %v511_v3  ;;  %483 = vmatpush1.bf16.xpose.msra.mxu1 %v511_v3  ;;  %v541_v29 = vld [vmem:[#allocation5 + $0xb0] ss:$8 sps:$4 sm:$0xff]   ;;  %v542_v30 = vld [vmem:[#allocation5 + $0xc4] ss:$8 sps:$4 sm:$0xff]   ;;  %v544_v31 = vld [vmem:[#allocation5 + $0xc0] ss:$8 sps:$4 sm:$0xff]  }
  0x42   :  { %279 = vmatprep.subr.bf16.mxu0 %v512_v4  ;;  %468 = vmatprep.subr.bf16.mxu1 %v512_v4  ;;  %v545_v32 = vld [vmem:[#allocation5 + $0xd4] ss:$8 sps:$4 sm:$0xff]   ;;  %v547_v33 = vld [vmem:[#allocation5 + $0xd0] ss:$8 sps:$4 sm:$0xff]   ;;  %v548_v34 = vld [vmem:[#allocation5 + $0xe4] ss:$8 sps:$4 sm:$0xff]  }
  0x43   :  { %v550_v35 = vld [vmem:[#allocation5 + $0xe0] ss:$8 sps:$4 sm:$0xff]   ;;  %v551_v36 = vld [vmem:[#allocation5 + $0xf4] ss:$8 sps:$4 sm:$0xff]   ;;  %v553_v37 = vld [vmem:[#allocation5 + $0xf0] ss:$8 sps:$4 sm:$0xff]  }
  0x44   :  { %v63_v40 = vld [vmem:[#allocation2 + $0x20] sm:$0xff]  ;;  %v65_v41 = vld [vmem:[#allocation2 + $0x30] sm:$0xff]  ;;  %v107_v46 = vsub.s32 0, %v106_v45  ;;  %v111_v48 = vsub.s32 1, %v106_v45  ;;  %v389_v38 = vld [vmem:[#allocation7 + $0x28] sm:$0xff] }
  0x45   :  { %v69_v43 = vpack.c.bf16 %v65_v41, %v63_v40  ;;  %v103_v47 = vld [vmem:[%s795_s2] sm:$0x3]  ;;  %s687_s2 = smov [#allocation8]  }
  0x46   :  { %v108_v49 = vrot.slane %v103_v47, %v107_v46  ;;  %v112_v50 = vrot.slane %v103_v47, %v111_v48  ;;  %v390_v46 = vld [vmem:[#allocation7 + $0x30] sm:$0xff]  ;;  %s413_s28 = sshll.u32 %s687_s2, 4  ;;  %s414_s28 = int_to_ptr.vmem [resolvable:$true] %s413_s28 }
  0x47   :  { %s652_s29 = scalar_lea.vmem %s414_s28, 1024  ;;  %p657_p11 = scmp.lt.s32.totalorder %s414_s28, %s414_s28 }
  0x48   :  { %p653_p10 = scmp.ne.s32.totalorder %s414_s28, %s652_s29  ;;  %p658_p12 = scmp.lt.s32.totalorder %s652_s29, %s652_s29 }
  0x49   :  { %280 = vmatpush1.bf16.xpose.msra.mxu0 %v514_v5  ;;  %484 = vmatpush1.bf16.xpose.msra.mxu1 %v514_v5 }
  0x4a   :  { %281 = vmatprep.subr.bf16.mxu0 %v515_v6  ;;  %469 = vmatprep.subr.bf16.mxu1 %v515_v6  ;;  %p659_p13 = por %p658_p12, %p657_p11 }
  0x4c   :  { %p660_p0 = pnand %p659_p13, %p653_p10 }
  0x51   :  { %282 = vmatpush1.bf16.xpose.msra.mxu0 %v517_v12  ;;  %485 = vmatpush1.bf16.xpose.msra.mxu1 %v517_v12 }
  0x52   :  { %283 = vmatprep.subr.bf16.mxu0 %v518_v14  ;;  %470 = vmatprep.subr.bf16.mxu1 %v518_v14 }
  0x59   :  { %284 = vmatpush1.bf16.xpose.msra.mxu0 %v520_v15  ;;  %486 = vmatpush1.bf16.xpose.msra.mxu1 %v520_v15 }
  0x5a   :  { %285 = vmatprep.subr.bf16.mxu0 %v521_v16  ;;  %471 = vmatprep.subr.bf16.mxu1 %v521_v16 }
  0x61   :  { %286 = vmatpush1.bf16.xpose.msra.mxu0 %v523_v17  ;;  %487 = vmatpush1.bf16.xpose.msra.mxu1 %v523_v17 }
  0x62   :  { %287 = vmatprep.subr.bf16.mxu0 %v524_v18  ;;  %472 = vmatprep.subr.bf16.mxu1 %v524_v18 }
  0x69   :  { %288 = vmatpush1.bf16.xpose.msra.mxu0 %v526_v19  ;;  %488 = vmatpush1.bf16.xpose.msra.mxu1 %v526_v19 }
  0x6a   :  { %289 = vmatprep.subr.bf16.mxu0 %v527_v20  ;;  %473 = vmatprep.subr.bf16.mxu1 %v527_v20 }
  0x71   :  { %290 = vmatpush1.bf16.xpose.msra.mxu0 %v529_v21  ;;  %489 = vmatpush1.bf16.xpose.msra.mxu1 %v529_v21 }
  0x72   :  { %291 = vmatprep.subr.bf16.mxu0 %v530_v22  ;;  %474 = vmatprep.subr.bf16.mxu1 %v530_v22 }
  0x79   :  { %292 = vmatpush1.bf16.xpose.msra.mxu0 %v532_v23  ;;  %490 = vmatpush1.bf16.xpose.msra.mxu1 %v532_v23 }
  0x7a   :  { %293 = vmatprep.subr.bf16.mxu0 %v533_v24  ;;  %475 = vmatprep.subr.bf16.mxu1 %v533_v24 }
  0x81   :  { %294 = vmatpush1.bf16.xpose.msra.mxu0 %v535_v25  ;;  %491 = vmatpush1.bf16.xpose.msra.mxu1 %v535_v25 }
  0x82   :  { %295 = vmatprep.subr.bf16.mxu0 %v536_v26  ;;  %476 = vmatprep.subr.bf16.mxu1 %v536_v26 }
  0x89   :  { %296 = vmatpush1.bf16.xpose.msra.mxu0 %v538_v27  ;;  %492 = vmatpush1.bf16.xpose.msra.mxu1 %v538_v27 }
  0x8a   :  { %297 = vmatprep.subr.bf16.mxu0 %v539_v28  ;;  %477 = vmatprep.subr.bf16.mxu1 %v539_v28  ;;  %v384_v28 = vld [vmem:[#allocation7] sm:$0xff] }
  0x91   :  { %298 = vmatpush1.bf16.xpose.msra.mxu0 %v541_v29  ;;  %493 = vmatpush1.bf16.xpose.msra.mxu1 %v541_v29 }
  0x92   :  { %299 = vmatprep.subr.bf16.mxu0 %v542_v30  ;;  %478 = vmatprep.subr.bf16.mxu1 %v542_v30 }
  0x99   :  { %300 = vmatpush1.bf16.xpose.msra.mxu0 %v544_v31  ;;  %494 = vmatpush1.bf16.xpose.msra.mxu1 %v544_v31  ;;  %v388_v31 = vld [vmem:[#allocation7 + $0x20] sm:$0xff] }
  0x9a   :  { %301 = vmatprep.subr.bf16.mxu0 %v545_v32  ;;  %479 = vmatprep.subr.bf16.mxu1 %v545_v32 }
  0xa1   :  { %302 = vmatpush1.bf16.xpose.msra.mxu0 %v547_v33  ;;  %495 = vmatpush1.bf16.xpose.msra.mxu1 %v547_v33 }
  0xa2   :  { %303 = vmatprep.subr.bf16.mxu0 %v548_v34  ;;  %480 = vmatprep.subr.bf16.mxu1 %v548_v34  ;;  %v385_v34 = vld [vmem:[#allocation7 + $0x8] sm:$0xff] }
  0xa9   :  { %304 = vmatpush1.bf16.xpose.msra.mxu0 %v550_v35  ;;  %496 = vmatpush1.bf16.xpose.msra.mxu1 %v550_v35 }
  0xaa   :  { %305 = vmatprep.subr.bf16.mxu0 %v551_v36  ;;  %481 = vmatprep.subr.bf16.mxu1 %v551_v36 }
  0xb1   :  { %306 = vmatpush1.bf16.xpose.msra.mxu0 %v553_v37  ;;  %497 = vmatpush1.bf16.xpose.msra.mxu1 %v553_v37 }
  0xb8   :  { %308 = vmatmul.mubr.bf16.vlgmr.msra.gmra.mrb[0].mxu0 %v67_v42  ;;  %318 = vmatmul.mubr.bf16.vlgmr.msra.gmra.mrb[0].mxu1 %v69_v43  ;;  %v386_v42 = vld [vmem:[#allocation7 + $0x10] sm:$0xff] }
 0x18b   :  { %v309_v51 = vpop.f32.mrb[0].mxu0  ;;  %v319_v52 = vpop.f32.mrb[0].mxu1 }
 0x18c   :  { %v310_v53 = vadd.f32 %v309_v51, %v108_v49  ;;  %v320_v54 = vadd.f32 %v319_v52, %v108_v49  ;;  %v311_v55 = vpop.f32.mrb[1].mxu0  ;;  %v321_v56 = vpop.f32.mrb[1].mxu1 }
 0x18d   :  { %v312_v57 = vadd.f32 %v311_v55, %v112_v50  ;;  %v758_v58 = vadd.f32 %v321_v56, %v112_v50  ;;  %v313_v59 = vpop.f32.mrb[2].mxu0  ;;  %v323_v60 = vpop.f32.mrb[2].mxu1 }
 0x18e   :  { %v458_v61 = vmul.f32 -1.442695, %v310_v53  ;;  %v462_v62 = vmul.f32 -1.442695, %v320_v54  ;;  %v760_v63 = vadd.f32 %v313_v59, %v108_v49  ;;  %v762_v0 = vadd.f32 %v323_v60, %v108_v49  ;;  %v315_v1 = vpop.f32.mrb[3].mxu0  ;;  %v325_v2 = vpop.f32.mrb[3].mxu1 }
 0x18f   :  { %v459_v3 = vmul.f32 -1.442695, %v312_v57  ;;  %v463_v4 = vmul.f32 -1.442695, %v758_v58  ;;  %v765_v5 = vadd.f32 %v315_v1, %v112_v50  ;;  %v767_v6 = vadd.f32 %v325_v2, %v112_v50  ;;  %v387_v50 = vld [vmem:[#allocation7 + $0x18] sm:$0xff] }
 0x190   :  { %554 = vpow2.f32 %v458_v61  ;;  %v460_v7 = vmul.f32 -1.442695, %v760_v63  ;;  %v464_v8 = vmul.f32 -1.442695, %v762_v0 }
 0x191   :  { %556 = vpow2.f32 %v462_v62  ;;  %v461_v9 = vmul.f32 -1.442695, %v765_v5  ;;  %v465_v10 = vmul.f32 -1.442695, %v767_v6 }
 0x192   :  { %558 = vpow2.f32 %v459_v3 }
 0x193   :  { %560 = vpow2.f32 %v463_v4 }
 0x194   :  { %562 = vpow2.f32 %v460_v7 }
 0x195   :  { %564 = vpow2.f32 %v464_v8 }
 0x196   :  { %566 = vpow2.f32 %v461_v9 }
 0x197   :  { %568 = vpow2.f32 %v465_v10 }
 0x19a   :  { %v555_v11 = vpop.eup %554 }
 0x19b   :  { %v557_v12 = vpop.eup %556  ;;  %v352_v13 = vadd.f32 1.0, %v555_v11 }
 0x19c   :  { %v559_v14 = vpop.eup %558  ;;  %v356_v15 = vadd.f32 1.0, %v557_v12 }
 0x19d   :  { %v561_v16 = vpop.eup %560  ;;  %570 = vrcp.f32 %v352_v13  ;;  %v353_v17 = vadd.f32 1.0, %v559_v14 }
 0x19e   :  { %v563_v18 = vpop.eup %562  ;;  %572 = vrcp.f32 %v356_v15  ;;  %v357_v19 = vadd.f32 1.0, %v561_v16 }
 0x19f   :  { %v565_v20 = vpop.eup %564  ;;  %574 = vrcp.f32 %v353_v17  ;;  %v354_v21 = vadd.f32 1.0, %v563_v18 }
 0x1a0   :  { %v567_v22 = vpop.eup %566  ;;  %576 = vrcp.f32 %v357_v19  ;;  %v358_v23 = vadd.f32 1.0, %v565_v20 }
 0x1a1   :  { %v569_v24 = vpop.eup %568  ;;  %578 = vrcp.f32 %v354_v21  ;;  %v355_v25 = vadd.f32 1.0, %v567_v22 }
 0x1a2   :  { %580 = vrcp.f32 %v358_v23  ;;  %v359_v26 = vadd.f32 1.0, %v569_v24 }
 0x1a3   :  { %582 = vrcp.f32 %v355_v25 }
 0x1a4   :  { %584 = vrcp.f32 %v359_v26 }
 0x1a7   :  { %v571_v27 = vpop.eup %570 }
 0x1a8   :  { %v573_v29 = vpop.eup %572  ;;  %v376_v30 = vmul.f32 %v571_v27, %v310_v53 }
 0x1a9   :  { %v575_v32 = vpop.eup %574  ;;  %v380_v33 = vmul.f32 %v573_v29, %v320_v54  ;;  %v391_v54 = vld [vmem:[#allocation7 + $0x38] sm:$0xff] }
 0x1aa   :  { %v577_v35 = vpop.eup %576  ;;  %v392_v36 = vadd.f32 %v384_v28, %v376_v30  ;;  %v377_v37 = vmul.f32 %v575_v32, %v312_v57 }
 0x1ab   :  { %v579_v39 = vpop.eup %578  ;;  %v396_v40 = vadd.f32 %v388_v31, %v380_v33  ;;  %v381_v41 = vmul.f32 %v577_v35, %v758_v58 }
 0x1ac   :  { %v581_v43 = vpop.eup %580  ;;  %400 = vst [vmem:[#allocation8] sm:$0xff] %v392_v36  ;;  %v393_v44 = vadd.f32 %v385_v34, %v377_v37  ;;  %v378_v45 = vmul.f32 %v579_v39, %v760_v63 }
 0x1ad   :  { %v583_v47 = vpop.eup %582  ;;  %404 = vst [vmem:[#allocation8 + $0x20] sm:$0xff] %v396_v40  ;;  %v397_v48 = vadd.f32 %v389_v38, %v381_v41  ;;  %v382_v49 = vmul.f32 %v581_v43, %v762_v0 }
 0x1ae   :  { %v585_v51 = vpop.eup %584  ;;  %401 = vst [vmem:[#allocation8 + $0x8] sm:$0xff] %v393_v44  ;;  %v394_v52 = vadd.f32 %v386_v42, %v378_v45  ;;  %v379_v53 = vmul.f32 %v583_v47, %v765_v5 }
 0x1af   :  { %405 = vst [vmem:[#allocation8 + $0x28] sm:$0xff] %v397_v48  ;;  %v398_v55 = vadd.f32 %v390_v46, %v382_v49  ;;  %v383_v56 = vmul.f32 %v585_v51, %v767_v6 }
 0x1b0   :  { %402 = vst [vmem:[#allocation8 + $0x10] sm:$0xff] %v394_v52  ;;  %v395_v57 = vadd.f32 %v387_v50, %v379_v53 }
 0x1b1   :  { %406 = vst [vmem:[#allocation8 + $0x30] sm:$0xff] %v398_v55  ;;  %v399_v58 = vadd.f32 %v391_v54, %v383_v56 }
 0x1b2   :  { %403 = vst [vmem:[#allocation8 + $0x18] sm:$0xff] %v395_v57 }
 0x1b3   :  { %407 = vst [vmem:[#allocation8 + $0x38] sm:$0xff] %v399_v58 }
 0x1b4   :  { %663 = shalt.err (!%p660_p0)
}
 0x1b5   :  { %s664_s6 = scalar_lea.hbm %s797_s4, 1024 }
 0x1b6   :  { %p665_p1 = scmp.ne.s32.totalorder %s797_s4, %s664_s6  ;;  %p668_p2 = scmp.lt.u32.totalorder %s664_s6, %s797_s4 }
 0x1b8   :  { %p670_p3 = pnand %p668_p2, %p665_p1 }
 0x1ba   :  { %673 = shalt.err (!%p670_p3)
}
 0x1bb   :  { %419 = dma.vmem_to_hbm [thread:$0]  %s414_s28, 1024, %s797_s4, [#allocation4], %s684_s1, %s684_s1, %s685_s13  }
 0x1bc   :  { %678 = dma.done.wait [#allocation4], 1024  }
 0x1bd   :  { %679 = vsyncadd [#allocation4], 4294966272 }
 0x1be   :  { %423 = vsyncpa [#allocation3], 1 }
 0x1bf   :  { %424 = vsyncpa [#allocation6], 1 }
 0x1c0   :  { %425 = vsyncpa [#allocation4], 1 }

</bundles_post_ra>
